<compile_context>
chip_gen: v7x
topology: tpu7x:2x2x1
jax: 0.10.0
libtpu: 0.0.40
codegen_flags: <defaults>
</compile_context>

<pallas_src>
import functools

import jax
import jax.numpy as jnp
from jax import lax
from jax.experimental import pallas as pl
from jax.experimental.pallas import tpu as pltpu


def _pick_tile(dim: int, preferred: int, align: int) -> int:
    """Largest tile <= preferred that divides `dim` and is `align`-aligned.

    Falls back to the full dimension (always a legal Mosaic block)."""
    if dim <= preferred:
        return dim
    t = (preferred // align) * align
    while t >= align:
        if dim % t == 0:
            return t
        t -= align
    return dim


_WEIGHT_SLAB_BUDGET = 8 * 1024 * 1024  # bytes; full-(K,N) weight block below this
_VMEM_LIMIT = 48 * 1024 * 1024         # safe on v7x (64 MiB), uses headroom on v5e/v6e


# ---------------------------------------------------------------------------
# Kernel 1: stacked linear   y[s] = x @ w[s] + b[s]
#   x: (M, K) bf16   w: (S, K, N) bf16   b: (S, 1, N) f32   y: (S, M, N)
#
# Fast path (weight slab fits VMEM budget): grid = (M/tm, S); the weight block is
# the full (K, N) slab (grid-invariant in the inner sense), no K loop, no scratch.
# Fallback (huge C): grid = (M/tm, N/tn, S, K/tk) with f32 accumulator scratch.
# ---------------------------------------------------------------------------
def _stacked_linear_full_kernel(x_ref, w_ref, b_ref, o_ref):
    acc = jnp.dot(x_ref[...], w_ref[...], preferred_element_type=jnp.float32)
    o_ref[...] = (acc + b_ref[...].astype(jnp.float32)).astype(o_ref.dtype)


def _stacked_linear_tiled_kernel(x_ref, w_ref, b_ref, o_ref, acc_ref):
    @pl.when(pl.program_id(3) == 0)
    def _init():
        acc_ref[...] = jnp.zeros(acc_ref.shape, acc_ref.dtype)

    acc_ref[...] += jnp.dot(x_ref[...], w_ref[...], preferred_element_type=jnp.float32)

    @pl.when(pl.program_id(3) == pl.num_programs(3) - 1)
    def _finalize():
        o_ref[...] = (acc_ref[...] + b_ref[...].astype(jnp.float32)).astype(o_ref.dtype)


def stacked_linear(x2d, w, b, *, out_dtype=None, tm=512, tn=512, tk=512):
    """y[s] = x2d @ w[s] + b[s] for s in range(S), as one pipelined Pallas call."""
    M, K = x2d.shape
    S, K2, N = w.shape
    assert K2 == K
    out_dtype = out_dtype if out_dtype is not None else x2d.dtype
    tm = _pick_tile(M, tm, 8)

    w_slab_bytes = K * N * jnp.dtype(w.dtype).itemsize
    if w_slab_bytes <= _WEIGHT_SLAB_BUDGET:
        # Full-weight-slab path: no reduction axis, no accumulator.
        grid = (M // tm, S)  # M first -> balanced 2-way split on v7x megacore
        return pl.pallas_call(
            _stacked_linear_full_kernel,
            out_shape=jax.ShapeDtypeStruct((S, M, N), out_dtype),
            grid_spec=pltpu.PrefetchScalarGridSpec(
                num_scalar_prefetch=0,
                grid=grid,
                in_specs=[
                    pl.BlockSpec((tm, K), lambda i, s: (i, 0)),
                    pl.BlockSpec((None, K, N), lambda i, s: (s, 0, 0)),
                    pl.BlockSpec((None, 1, N), lambda i, s: (s, 0, 0)),
                ],
                out_specs=pl.BlockSpec((None, tm, N), lambda i, s: (s, i, 0)),
            ),
            compiler_params=pltpu.CompilerParams(
                dimension_semantics=("parallel", "parallel"),
                vmem_limit_bytes=_VMEM_LIMIT,
            ),
        )(x2d, w, b)

    # Fallback: tile N and K for very large C (K reduction last, accumulated in VMEM).
    tn = _pick_tile(N, tn, 128)
    tk = _pick_tile(K, tk, 128)
    grid = (M // tm, N // tn, S, K // tk)
    return pl.pallas_call(
        _stacked_linear_tiled_kernel,
        out_shape=jax.ShapeDtypeStruct((S, M, N), out_dtype),
        grid_spec=pltpu.PrefetchScalarGridSpec(
            num_scalar_prefetch=0,
            grid=grid,
            in_specs=[
                pl.BlockSpec((tm, tk), lambda i, j, s, k: (i, k)),
                pl.BlockSpec((None, tk, tn), lambda i, j, s, k: (s, k, j)),
                pl.BlockSpec((None, 1, tn), lambda i, j, s, k: (s, 0, j)),
            ],
            out_specs=pl.BlockSpec((None, tm, tn), lambda i, j, s, k: (s, i, j)),
            scratch_shapes=[pltpu.VMEM((tm, tn), jnp.float32)],
        ),
        compiler_params=pltpu.CompilerParams(
            dimension_semantics=("parallel", "parallel", "parallel", "arbitrary"),
            vmem_limit_bytes=_VMEM_LIMIT,
        ),
    )(x2d, w, b)


# ---------------------------------------------------------------------------
# Kernel 2: head-major flash attention
#   qkv_hm: (3, B, H, N, Dh)  ->  out: (B, H, N, Dh)
#   grid = (N/tq, B, H, N/tk); online softmax over the KV axis (last, arbitrary).
#   All per-step tensors are full (tq,*)/(tk,*) blocks: no sub-lane head slicing.
#   The softmax scale is already folded into the q weights (see prepare_params).
# ---------------------------------------------------------------------------
def _flash_attn_kernel(q_ref, k_ref, v_ref, o_ref, m_ref, l_ref, acc_ref):
    ki = pl.program_id(3)

    @pl.when(ki == 0)
    def _init():
        m_ref[...] = jnp.full(m_ref.shape, -jnp.inf, m_ref.dtype)
        l_ref[...] = jnp.zeros(l_ref.shape, l_ref.dtype)
        acc_ref[...] = jnp.zeros(acc_ref.shape, acc_ref.dtype)

    q = q_ref[...]  # (tq, Dh) bf16 (scale pre-folded)
    k = k_ref[...]  # (tk, Dh) bf16
    v = v_ref[...]  # (tk, Dh) bf16

    # scores: contract over Dh directly -- no transposed K tile materialized.
    s = lax.dot_general(
        q, k, (((1,), (1,)), ((), ())), preferred_element_type=jnp.float32
    )  # (tq, tk) f32

    m_prev = m_ref[...]  # (tq, 1)
    l_prev = l_ref[...]
    m_new = jnp.maximum(m_prev, jnp.max(s, axis=-1, keepdims=True))
    alpha = jnp.exp(m_prev - m_new)
    p = jnp.exp(s - m_new)  # f32 softmax math
    l_ref[...] = alpha * l_prev + jnp.sum(p, axis=-1, keepdims=True)
    m_ref[...] = m_new

    pv = lax.dot_general(
        p.astype(v.dtype), v, (((1,), (0,)), ((), ())),
        preferred_element_type=jnp.float32,
    )  # (tq, Dh) f32
    acc_ref[...] = alpha * acc_ref[...] + pv

    @pl.when(ki == pl.num_programs(3) - 1)
    def _finalize():
        inv = pl.reciprocal(l_ref[...], approx=True)  # EUP slot, essentially free
        o_ref[...] = (acc_ref[...] * inv).astype(o_ref.dtype)


def flash_attention(qkv_hm, *, tq=256, tk=256):
    _, B, H, N, Dh = qkv_hm.shape
    tq = _pick_tile(N, tq, 8)
    tk = _pick_tile(N, tk, 8)
    grid = (N // tq, B, H, N // tk)  # leading parallel axis first (v7x megacore)

    q_spec = pl.BlockSpec((None, None, None, tq, Dh), lambda qi, b, h, ki: (0, b, h, qi, 0))
    k_spec = pl.BlockSpec((None, None, None, tk, Dh), lambda qi, b, h, ki: (1, b, h, ki, 0))
    v_spec = pl.BlockSpec((None, None, None, tk, Dh), lambda qi, b, h, ki: (2, b, h, ki, 0))
    o_spec = pl.BlockSpec((None, None, tq, Dh), lambda qi, b, h, ki: (b, h, qi, 0))

    return pl.pallas_call(
        _flash_attn_kernel,
        out_shape=jax.ShapeDtypeStruct((B, H, N, Dh), qkv_hm.dtype),
        grid_spec=pltpu.PrefetchScalarGridSpec(
            num_scalar_prefetch=0,
            grid=grid,
            in_specs=[q_spec, k_spec, v_spec],
            out_specs=o_spec,
            scratch_shapes=[
                pltpu.VMEM((tq, 1), jnp.float32),   # running max  m
                pltpu.VMEM((tq, 1), jnp.float32),   # running sum  l
                pltpu.VMEM((tq, Dh), jnp.float32),  # output accumulator
            ],
        ),
        compiler_params=pltpu.CompilerParams(
            dimension_semantics=("parallel", "parallel", "parallel", "arbitrary"),
            vmem_limit_bytes=_VMEM_LIMIT,
        ),
    )(qkv_hm, qkv_hm, qkv_hm)


# ---------------------------------------------------------------------------
# Module forward (glue is cheap reshapes/transposes; all matmuls/softmax in Pallas)
# ---------------------------------------------------------------------------
def attention_forward(x, kparams, num_heads, *, compute_dtype=jnp.bfloat16):
    B, N, C = x.shape
    assert C % num_heads == 0
    H = num_heads
    Dh = C // H

    x2d = x.reshape(B * N, C).astype(compute_dtype)

    # fused QKV projection -> (3, B*N, C) bf16 (softmax scale folded into q weights)
    qkv = stacked_linear(x2d, kparams["w_qkv"], kparams["b_qkv"], out_dtype=compute_dtype)

    # head-major layout for attention: (3, B, H, N, Dh)
    qkv_hm = qkv.reshape(3, B, N, H, Dh).transpose(0, 1, 3, 2, 4)

    o = flash_attention(qkv_hm)                              # (B, H, N, Dh) bf16
    o2d = o.transpose(0, 2, 1, 3).reshape(B * N, C)          # head merge -> (B*N, C)

    # output projection (dropouts are identity: attn_drop = proj_drop = 0)
    y = stacked_linear(o2d, kparams["w_proj"], kparams["b_proj"], out_dtype=x.dtype)
    return y.reshape(B, N, C)


def init_params(key, dim):
    """Parameters in the natural nn.Linear ('x @ w + b') layout (synthetic)."""
    k1, k2, k3, k4 = jax.random.split(key, 4)
    w_qkv = jax.random.normal(k1, (dim, 3 * dim), jnp.float32) * 0.05
    b_qkv = jax.random.normal(k2, (3 * dim,), jnp.float32) * 0.05
    w_proj = jax.random.normal(k3, (dim, dim), jnp.float32) * 0.05
    b_proj = jax.random.normal(k4, (dim,), jnp.float32) * 0.05
    return {"w_qkv": w_qkv, "b_qkv": b_qkv, "w_proj": w_proj, "b_proj": b_proj}


def prepare_params(params, num_heads, dtype=jnp.bfloat16):
    """One-time weight pre-formatting into kernel-friendly stacked bf16 layouts.

    The softmax scale (head_dim**-0.5) is folded into the q projection weight and
    bias here, so the attention kernel needs no per-step scaling at all."""
    C = params["w_proj"].shape[0]
    head_dim = C // num_heads
    scale = head_dim ** -0.5

    w_qkv = params["w_qkv"].reshape(C, 3, C).transpose(1, 0, 2)   # (3, C, C): q, k, v
    b_qkv = params["b_qkv"].reshape(3, 1, C)
    w_qkv = w_qkv.at[0].multiply(scale)
    b_qkv = b_qkv.at[0].multiply(scale)

    w_proj = params["w_proj"][None]                               # (1, C, C)
    b_proj = params["b_proj"].reshape(1, 1, C)
    return {
        "w_qkv": w_qkv.astype(dtype),
        "b_qkv": b_qkv.astype(jnp.float32),   # bias added in f32 inside the kernel
        "w_proj": w_proj.astype(dtype),
        "b_proj": b_proj.astype(jnp.float32),
    }


def reference_forward(x, params, num_heads):
    """Pure-JAX f32 reference identical to the PyTorch module (eval mode)."""
    B, N, C = x.shape
    head_dim = C // num_heads
    scale = head_dim ** -0.5
    qkv = x @ params["w_qkv"] + params["b_qkv"]
    qkv = qkv.reshape(B, N, 3, num_heads, head_dim).transpose(2, 0, 3, 1, 4)
    q, k, v = qkv[0], qkv[1], qkv[2]
    attn = jax.nn.softmax((q * scale) @ jnp.swapaxes(k, -2, -1), axis=-1)
    o = (attn @ v).transpose(0, 2, 1, 3).reshape(B, N, C)
    return o @ params["w_proj"] + params["b_proj"]


if __name__ == "__main__":
    B, N, dim, num_heads = 2, 8, 32, 8
    key = jax.random.PRNGKey(0)
    kx, kp = jax.random.split(key)
    x = jax.random.normal(kx, (B, N, dim), jnp.float32)
    params = init_params(kp, dim)
    kparams = prepare_params(params, num_heads)   # one-time weight pre-format

    fwd = jax.jit(functools.partial(attention_forward, num_heads=num_heads))
    y = jax.block_until_ready(fwd(x, kparams))

    y_ref = reference_forward(x, params, num_heads)
    assert y.shape == (B, N, dim)
    max_err = float(jnp.max(jnp.abs(y.astype(jnp.float32) - y_ref)))
    # bf16 MXU operands -> tolerance sized for bf16 rounding, not f32 parity.
    assert jnp.allclose(y.astype(jnp.float32), y_ref, atol=1e-2, rtol=1e-2), max_err
    print("KERNEL_OK")
</pallas_src>

<mosaic_0001>
module attributes {stable_mosaic.version = 11 : i64} {
  func.func @_stacked_linear_full_kernel(%arg0: i32, %arg1: i32, %arg2: memref<16x32xbf16, #tpu.memory_space<vmem>>, %arg3: memref<1x32x32xbf16, #tpu.memory_space<vmem>>, %arg4: memref<1x1x32xf32, #tpu.memory_space<vmem>>, %arg5: memref<1x16x32xbf16, #tpu.memory_space<vmem>>) attributes {dimension_semantics = [#tpu.dimension_semantics<parallel>, #tpu.dimension_semantics<parallel>], iteration_bounds = array<i64: 1, 3>, scalar_prefetch = 0 : i64, scratch_operands = 0 : i64, tpu.core_type = #tpu.core_type<tc>, window_params = [{transform_indices = @transform_0, window_bounds = array<i64: 16, 32>}, {transform_indices = @transform_1, window_bounds = array<i64: 1, 32, 32>}, {transform_indices = @transform_2, window_bounds = array<i64: 1, 1, 32>}, {transform_indices = @transform_3, window_bounds = array<i64: 1, 16, 32>}]} {
    %c0 = arith.constant 0 : index
    %c0_0 = arith.constant 0 : index
    %0 = vector.load %arg2[%c0, %c0_0] : memref<16x32xbf16, #tpu.memory_space<vmem>>, vector<16x32xbf16>
    %c0_1 = arith.constant 0 : index
    %c0_2 = arith.constant 0 : index
    %c0_3 = arith.constant 0 : index
    %1 = vector.load %arg3[%c0_1, %c0_2, %c0_3] : memref<1x32x32xbf16, #tpu.memory_space<vmem>>, vector<1x32x32xbf16>
    %2 = vector.shape_cast %1 : vector<1x32x32xbf16> to vector<32x32xbf16>
    %cst = arith.constant dense<0.000000e+00> : vector<16x32xf32>
    %3 = tpu.matmul %0, %2, %cst {dimension_numbers = #tpu.dot_dimension_numbers<[1], [0], [0], [1], [0, 0, 1, 1], [], []>} : vector<16x32xbf16>, vector<32x32xbf16>, vector<16x32xf32> -> vector<16x32xf32>
    %c0_4 = arith.constant 0 : index
    %c0_5 = arith.constant 0 : index
    %c0_6 = arith.constant 0 : index
    %4 = vector.load %arg4[%c0_4, %c0_5, %c0_6] : memref<1x1x32xf32, #tpu.memory_space<vmem>>, vector<1x1x32xf32>
    %5 = vector.shape_cast %4 : vector<1x1x32xf32> to vector<1x32xf32>
    %6 = vector.broadcast %5 : vector<1x32xf32> to vector<16x32xf32>
    %7 = arith.addf %3, %6 : vector<16x32xf32>
    %8 = arith.truncf %7 : vector<16x32xf32> to vector<16x32xbf16>
    %c0_7 = arith.constant 0 : index
    %c0_8 = arith.constant 0 : index
    %c0_9 = arith.constant 0 : index
    %9 = vector.load %arg5[%c0_7, %c0_8, %c0_9] : memref<1x16x32xbf16, #tpu.memory_space<vmem>>, vector<1x16x32xbf16>
    %10 = vector.shape_cast %9 : vector<1x16x32xbf16> to vector<16x32xbf16>
    %11 = vector.shape_cast %8 : vector<16x32xbf16> to vector<1x16x32xbf16>
    tpu.vector_store %arg5[%c0_7, %c0_8, %c0_9], %11 {strides = array<i32>} : memref<1x16x32xbf16, #tpu.memory_space<vmem>>, vector<1x16x32xbf16>,
    return
  }
  func.func @transform_0(%arg0: i32, %arg1: i32) -> (i32, i32) {
    %c0_i32 = arith.constant 0 : i32
    %c0_i32_0 = arith.constant 0 : i32
    return %arg0, %c0_i32 : i32, i32
  }
  func.func @transform_1(%arg0: i32, %arg1: i32) -> (i32, i32, i32) {
    %c0_i32 = arith.constant 0 : i32
    %c0_i32_0 = arith.constant 0 : i32
    %c0_i32_1 = arith.constant 0 : i32
    return %arg1, %c0_i32, %c0_i32_0 : i32, i32, i32
  }
  func.func @transform_2(%arg0: i32, %arg1: i32) -> (i32, i32, i32) {
    %c0_i32 = arith.constant 0 : i32
    %c0_i32_0 = arith.constant 0 : i32
    %c0_i32_1 = arith.constant 0 : i32
    return %arg1, %c0_i32, %c0_i32_0 : i32, i32, i32
  }
  func.func @transform_3(%arg0: i32, %arg1: i32) -> (i32, i32, i32) {
    %c0_i32 = arith.constant 0 : i32
    %c0_i32_0 = arith.constant 0 : i32
    return %arg1, %arg0, %c0_i32 : i32, i32, i32
  }
}

module attributes {stable_mosaic.version = 11 : i64} {
  func.func @_flash_attn_kernel(%arg0: i32, %arg1: i32, %arg2: i32, %arg3: i32, %arg4: memref<1x1x1x8x4xbf16, #tpu.memory_space<vmem>>, %arg5: memref<1x1x1x8x4xbf16, #tpu.memory_space<vmem>>, %arg6: memref<1x1x1x8x4xbf16, #tpu.memory_space<vmem>>, %arg7: memref<1x1x8x4xbf16, #tpu.memory_space<vmem>>, %arg8: memref<8x1xf32, #tpu.memory_space<vmem>>, %arg9: memref<8x1xf32, #tpu.memory_space<vmem>>, %arg10: memref<8x4xf32, #tpu.memory_space<vmem>>) attributes {dimension_semantics = [#tpu.dimension_semantics<parallel>, #tpu.dimension_semantics<parallel>, #tpu.dimension_semantics<parallel>, #tpu.dimension_semantics<arbitrary>], iteration_bounds = array<i64: 1, 2, 8, 1>, scalar_prefetch = 0 : i64, scratch_operands = 3 : i64, tpu.core_type = #tpu.core_type<tc>, window_params = [{transform_indices = @transform_0, window_bounds = array<i64: 1, 1, 1, 8, 4>}, {transform_indices = @transform_1, window_bounds = array<i64: 1, 1, 1, 8, 4>}, {transform_indices = @transform_2, window_bounds = array<i64: 1, 1, 1, 8, 4>}, {transform_indices = @transform_3, window_bounds = array<i64: 1, 1, 8, 4>}]} {
    %c0_i32 = arith.constant 0 : i32
    %0 = arith.cmpi eq, %arg3, %c0_i32 : i32
    %1 = arith.extui %0 : i1 to i32
    %c0_i32_0 = arith.constant 0 : i32
    %2 = arith.cmpi ne, %1, %c0_i32_0 : i32
    scf.if %2 {
      %cst_32 = arith.constant 0xFF800000 : f32
      %36 = vector.broadcast %cst_32 : f32 to vector<8x1xf32>
      %c0_33 = arith.constant 0 : index
      %c0_34 = arith.constant 0 : index
      %37 = vector.load %arg8[%c0_33, %c0_34] : memref<8x1xf32, #tpu.memory_space<vmem>>, vector<8x1xf32>
      tpu.vector_store %arg8[%c0_33, %c0_34], %36 {strides = array<i32>} : memref<8x1xf32, #tpu.memory_space<vmem>>, vector<8x1xf32>,
      %cst_35 = arith.constant 0.000000e+00 : f32
      %38 = vector.broadcast %cst_35 : f32 to vector<8x1xf32>
      %c0_36 = arith.constant 0 : index
      %c0_37 = arith.constant 0 : index
      %39 = vector.load %arg9[%c0_36, %c0_37] : memref<8x1xf32, #tpu.memory_space<vmem>>, vector<8x1xf32>
      tpu.vector_store %arg9[%c0_36, %c0_37], %38 {strides = array<i32>} : memref<8x1xf32, #tpu.memory_space<vmem>>, vector<8x1xf32>,
      %cst_38 = arith.constant 0.000000e+00 : f32
      %40 = vector.broadcast %cst_38 : f32 to vector<8x4xf32>
      %c0_39 = arith.constant 0 : index
      %c0_40 = arith.constant 0 : index
      %41 = vector.load %arg10[%c0_39, %c0_40] : memref<8x4xf32, #tpu.memory_space<vmem>>, vector<8x4xf32>
      tpu.vector_store %arg10[%c0_39, %c0_40], %40 {strides = array<i32>} : memref<8x4xf32, #tpu.memory_space<vmem>>, vector<8x4xf32>,
    } else {
    }
    %c0 = arith.constant 0 : index
    %c0_1 = arith.constant 0 : index
    %c0_2 = arith.constant 0 : index
    %c0_3 = arith.constant 0 : index
    %c0_4 = arith.constant 0 : index
    %3 = vector.load %arg4[%c0, %c0_1, %c0_2, %c0_3, %c0_4] : memref<1x1x1x8x4xbf16, #tpu.memory_space<vmem>>, vector<1x1x1x8x4xbf16>
    %4 = vector.shape_cast %3 : vector<1x1x1x8x4xbf16> to vector<8x4xbf16>
    %c0_5 = arith.constant 0 : index
    %c0_6 = arith.constant 0 : index
    %c0_7 = arith.constant 0 : index
    %c0_8 = arith.constant 0 : index
    %c0_9 = arith.constant 0 : index
    %5 = vector.load %arg5[%c0_5, %c0_6, %c0_7, %c0_8, %c0_9] : memref<1x1x1x8x4xbf16, #tpu.memory_space<vmem>>, vector<1x1x1x8x4xbf16>
    %6 = vector.shape_cast %5 : vector<1x1x1x8x4xbf16> to vector<8x4xbf16>
    %c0_10 = arith.constant 0 : index
    %c0_11 = arith.constant 0 : index
    %c0_12 = arith.constant 0 : index
    %c0_13 = arith.constant 0 : index
    %c0_14 = arith.constant 0 : index
    %7 = vector.load %arg6[%c0_10, %c0_11, %c0_12, %c0_13, %c0_14] : memref<1x1x1x8x4xbf16, #tpu.memory_space<vmem>>, vector<1x1x1x8x4xbf16>
    %8 = vector.shape_cast %7 : vector<1x1x1x8x4xbf16> to vector<8x4xbf16>
    %cst = arith.constant dense<0.000000e+00> : vector<8x8xf32>
    %9 = tpu.matmul %4, %6, %cst {dimension_numbers = #tpu.dot_dimension_numbers<[1], [1], [0], [0], [0, 0, 1, 0], [], []>} : vector<8x4xbf16>, vector<8x4xbf16>, vector<8x8xf32> -> vector<8x8xf32>
    %c0_15 = arith.constant 0 : index
    %c0_16 = arith.constant 0 : index
    %10 = vector.load %arg8[%c0_15, %c0_16] : memref<8x1xf32, #tpu.memory_space<vmem>>, vector<8x1xf32>
    %c0_17 = arith.constant 0 : index
    %c0_18 = arith.constant 0 : index
    %11 = vector.load %arg9[%c0_17, %c0_18] : memref<8x1xf32, #tpu.memory_space<vmem>>, vector<8x1xf32>
    %cst_19 = arith.constant dense<0xFF800000> : vector<8xf32>
    %12 = vector.multi_reduction <maximumf>, %9, %cst_19 [1] : vector<8x8xf32> to vector<8xf32>
    %13 = vector.shape_cast %12 : vector<8xf32> to vector<8x1xf32>
    %14 = arith.maximumf %10, %13 : vector<8x1xf32>
    %15 = arith.subf %10, %14 : vector<8x1xf32>
    %16 = math.exp %15 : vector<8x1xf32>
    %17 = vector.broadcast %14 : vector<8x1xf32> to vector<8x8xf32>
    %18 = arith.subf %9, %17 : vector<8x8xf32>
    %19 = math.exp %18 : vector<8x8xf32>
    %20 = arith.mulf %16, %11 : vector<8x1xf32>
    %cst_20 = arith.constant dense<0.000000e+00> : vector<8xf32>
    %21 = vector.multi_reduction <add>, %19, %cst_20 [1] : vector<8x8xf32> to vector<8xf32>
    %22 = vector.shape_cast %21 : vector<8xf32> to vector<8x1xf32>
    %23 = arith.addf %20, %22 : vector<8x1xf32>
    %c0_21 = arith.constant 0 : index
    %c0_22 = arith.constant 0 : index
    %24 = vector.load %arg9[%c0_21, %c0_22] : memref<8x1xf32, #tpu.memory_space<vmem>>, vector<8x1xf32>
    tpu.vector_store %arg9[%c0_21, %c0_22], %23 {strides = array<i32>} : memref<8x1xf32, #tpu.memory_space<vmem>>, vector<8x1xf32>,
    %c0_23 = arith.constant 0 : index
    %c0_24 = arith.constant 0 : index
    %25 = vector.load %arg8[%c0_23, %c0_24] : memref<8x1xf32, #tpu.memory_space<vmem>>, vector<8x1xf32>
    tpu.vector_store %arg8[%c0_23, %c0_24], %14 {strides = array<i32>} : memref<8x1xf32, #tpu.memory_space<vmem>>, vector<8x1xf32>,
    %26 = arith.truncf %19 : vector<8x8xf32> to vector<8x8xbf16>
    %cst_25 = arith.constant dense<0.000000e+00> : vector<8x4xf32>
    %27 = tpu.matmul %26, %8, %cst_25 {dimension_numbers = #tpu.dot_dimension_numbers<[1], [0], [0], [1], [0, 0, 1, 1], [], []>} : vector<8x8xbf16>, vector<8x4xbf16>, vector<8x4xf32> -> vector<8x4xf32>
    %c0_26 = arith.constant 0 : index
    %c0_27 = arith.constant 0 : index
    %28 = vector.load %arg10[%c0_26, %c0_27] : memref<8x4xf32, #tpu.memory_space<vmem>>, vector<8x4xf32>
    %29 = vector.broadcast %16 : vector<8x1xf32> to vector<8x4xf32>
    %30 = arith.mulf %29, %28 : vector<8x4xf32>
    %31 = arith.addf %30, %27 : vector<8x4xf32>
    %c0_28 = arith.constant 0 : index
    %c0_29 = arith.constant 0 : index
    %32 = vector.load %arg10[%c0_28, %c0_29] : memref<8x4xf32, #tpu.memory_space<vmem>>, vector<8x4xf32>
    tpu.vector_store %arg10[%c0_28, %c0_29], %31 {strides = array<i32>} : memref<8x4xf32, #tpu.memory_space<vmem>>, vector<8x4xf32>,
    %c0_i32_30 = arith.constant 0 : i32
    %33 = arith.cmpi eq, %arg3, %c0_i32_30 : i32
    %34 = arith.extui %33 : i1 to i32
    %c0_i32_31 = arith.constant 0 : i32
    %35 = arith.cmpi ne, %34, %c0_i32_31 : i32
    scf.if %35 {
      %c0_32 = arith.constant 0 : index
      %c0_33 = arith.constant 0 : index
      %36 = vector.load %arg9[%c0_32, %c0_33] : memref<8x1xf32, #tpu.memory_space<vmem>>, vector<8x1xf32>
      %37 = tpu.reciprocal %36 {approx = true} : vector<8x1xf32> -> vector<8x1xf32>
      %c0_34 = arith.constant 0 : index
      %c0_35 = arith.constant 0 : index
      %38 = vector.load %arg10[%c0_34, %c0_35] : memref<8x4xf32, #tpu.memory_space<vmem>>, vector<8x4xf32>
      %39 = vector.broadcast %37 : vector<8x1xf32> to vector<8x4xf32>
      %40 = arith.mulf %38, %39 : vector<8x4xf32>
      %41 = arith.truncf %40 : vector<8x4xf32> to vector<8x4xbf16>
      %c0_36 = arith.constant 0 : index
      %c0_37 = arith.constant 0 : index
      %c0_38 = arith.constant 0 : index
      %c0_39 = arith.constant 0 : index
      %42 = vector.load %arg7[%c0_36, %c0_37, %c0_38, %c0_39] : memref<1x1x8x4xbf16, #tpu.memory_space<vmem>>, vector<1x1x8x4xbf16>
      %43 = vector.shape_cast %42 : vector<1x1x8x4xbf16> to vector<8x4xbf16>
      %44 = vector.shape_cast %41 : vector<8x4xbf16> to vector<1x1x8x4xbf16>
      tpu.vector_store %arg7[%c0_36, %c0_37, %c0_38, %c0_39], %44 {strides = array<i32>} : memref<1x1x8x4xbf16, #tpu.memory_space<vmem>>, vector<1x1x8x4xbf16>,
    } else {
    }
    return
  }
  func.func @transform_0(%arg0: i32, %arg1: i32, %arg2: i32, %arg3: i32) -> (i32, i32, i32, i32, i32) {
    %c0_i32 = arith.constant 0 : i32
    %c0_i32_0 = arith.constant 0 : i32
    %c0_i32_1 = arith.constant 0 : i32
    return %c0_i32, %arg1, %arg2, %arg0, %c0_i32_0 : i32, i32, i32, i32, i32
  }
  func.func @transform_1(%arg0: i32, %arg1: i32, %arg2: i32, %arg3: i32) -> (i32, i32, i32, i32, i32) {
    %c1_i32 = arith.constant 1 : i32
    %c0_i32 = arith.constant 0 : i32
    %c0_i32_0 = arith.constant 0 : i32
    return %c1_i32, %arg1, %arg2, %arg3, %c0_i32 : i32, i32, i32, i32, i32
  }
  func.func @transform_2(%arg0: i32, %arg1: i32, %arg2: i32, %arg3: i32) -> (i32, i32, i32, i32, i32) {
    %c2_i32 = arith.constant 2 : i32
    %c0_i32 = arith.constant 0 : i32
    %c0_i32_0 = arith.constant 0 : i32
    return %c2_i32, %arg1, %arg2, %arg3, %c0_i32 : i32, i32, i32, i32, i32
  }
  func.func @transform_3(%arg0: i32, %arg1: i32, %arg2: i32, %arg3: i32) -> (i32, i32, i32, i32) {
    %c0_i32 = arith.constant 0 : i32
    %c0_i32_0 = arith.constant 0 : i32
    return %arg1, %arg2, %arg0, %c0_i32 : i32, i32, i32, i32
  }
}

module attributes {stable_mosaic.version = 11 : i64} {
  func.func @_stacked_linear_full_kernel(%arg0: i32, %arg1: i32, %arg2: memref<16x32xbf16, #tpu.memory_space<vmem>>, %arg3: memref<1x32x32xbf16, #tpu.memory_space<vmem>>, %arg4: memref<1x1x32xf32, #tpu.memory_space<vmem>>, %arg5: memref<1x16x32xf32, #tpu.memory_space<vmem>>) attributes {dimension_semantics = [#tpu.dimension_semantics<parallel>, #tpu.dimension_semantics<parallel>], iteration_bounds = array<i64: 1, 1>, scalar_prefetch = 0 : i64, scratch_operands = 0 : i64, tpu.core_type = #tpu.core_type<tc>, window_params = [{transform_indices = @transform_0, window_bounds = array<i64: 16, 32>}, {transform_indices = @transform_1, window_bounds = array<i64: 1, 32, 32>}, {transform_indices = @transform_2, window_bounds = array<i64: 1, 1, 32>}, {transform_indices = @transform_3, window_bounds = array<i64: 1, 16, 32>}]} {
    %c0 = arith.constant 0 : index
    %c0_0 = arith.constant 0 : index
    %0 = vector.load %arg2[%c0, %c0_0] : memref<16x32xbf16, #tpu.memory_space<vmem>>, vector<16x32xbf16>
    %c0_1 = arith.constant 0 : index
    %c0_2 = arith.constant 0 : index
    %c0_3 = arith.constant 0 : index
    %1 = vector.load %arg3[%c0_1, %c0_2, %c0_3] : memref<1x32x32xbf16, #tpu.memory_space<vmem>>, vector<1x32x32xbf16>
    %2 = vector.shape_cast %1 : vector<1x32x32xbf16> to vector<32x32xbf16>
    %cst = arith.constant dense<0.000000e+00> : vector<16x32xf32>
    %3 = tpu.matmul %0, %2, %cst {dimension_numbers = #tpu.dot_dimension_numbers<[1], [0], [0], [1], [0, 0, 1, 1], [], []>} : vector<16x32xbf16>, vector<32x32xbf16>, vector<16x32xf32> -> vector<16x32xf32>
    %c0_4 = arith.constant 0 : index
    %c0_5 = arith.constant 0 : index
    %c0_6 = arith.constant 0 : index
    %4 = vector.load %arg4[%c0_4, %c0_5, %c0_6] : memref<1x1x32xf32, #tpu.memory_space<vmem>>, vector<1x1x32xf32>
    %5 = vector.shape_cast %4 : vector<1x1x32xf32> to vector<1x32xf32>
    %6 = vector.broadcast %5 : vector<1x32xf32> to vector<16x32xf32>
    %7 = arith.addf %3, %6 : vector<16x32xf32>
    %c0_7 = arith.constant 0 : index
    %c0_8 = arith.constant 0 : index
    %c0_9 = arith.constant 0 : index
    %8 = vector.load %arg5[%c0_7, %c0_8, %c0_9] : memref<1x16x32xf32, #tpu.memory_space<vmem>>, vector<1x16x32xf32>
    %9 = vector.shape_cast %8 : vector<1x16x32xf32> to vector<16x32xf32>
    %10 = vector.shape_cast %7 : vector<16x32xf32> to vector<1x16x32xf32>
    tpu.vector_store %arg5[%c0_7, %c0_8, %c0_9], %10 {strides = array<i32>} : memref<1x16x32xf32, #tpu.memory_space<vmem>>, vector<1x16x32xf32>,
    return
  }
  func.func @transform_0(%arg0: i32, %arg1: i32) -> (i32, i32) {
    %c0_i32 = arith.constant 0 : i32
    %c0_i32_0 = arith.constant 0 : i32
    return %arg0, %c0_i32 : i32, i32
  }
  func.func @transform_1(%arg0: i32, %arg1: i32) -> (i32, i32, i32) {
    %c0_i32 = arith.constant 0 : i32
    %c0_i32_0 = arith.constant 0 : i32
    %c0_i32_1 = arith.constant 0 : i32
    return %arg1, %c0_i32, %c0_i32_0 : i32, i32, i32
  }
  func.func @transform_2(%arg0: i32, %arg1: i32) -> (i32, i32, i32) {
    %c0_i32 = arith.constant 0 : i32
    %c0_i32_0 = arith.constant 0 : i32
    %c0_i32_1 = arith.constant 0 : i32
    return %arg1, %c0_i32, %c0_i32_0 : i32, i32, i32
  }
  func.func @transform_3(%arg0: i32, %arg1: i32) -> (i32, i32, i32) {
    %c0_i32 = arith.constant 0 : i32
    %c0_i32_0 = arith.constant 0 : i32
    return %arg1, %arg0, %c0_i32 : i32, i32, i32
  }
}

</mosaic_0001>

<bundles_post_ra>
// kernel: attention_forward.3
= control target key start
LH: loop header
LB: loop body
LE: loop exit
PB: predicated region body
PF: predicated region fallthrough
CT: control target
= control target key end

     0   :  { %8 = vsyncpa [#allocation3], 0  ;;  %s788_s0 = inlined_call_operand.vmem [shape: bf16[16,32], index: 0, kind: input, shape index: {}]   ;;  %s789_s1 = inlined_call_operand.hbm [shape: bf16[3,32,32], index: 1, kind: input, shape index: {}]   ;;  %s790_s2 = inlined_call_operand.vmem [shape: f32[3,1,32], index: 2, kind: input, shape index: {}]   ;;  %s791_s3 = inlined_call_operand.vmem [shape: bf16[3,16,32], index: 3, kind: output, shape index: {}]  }
   0x1   :  { %10 = vsyncpa [#allocation3 + $0x1], 0  ;;  %s658_s12 = smov 0   ;;  %s660_s13 = smov 0  }
   0x2   :  { %s662_s14 = smov 0   ;;  %s664_s15 = smov 0  }
   0x3   :  { %s666_s16 = smov 0   ;;  %s668_s17 = smov 0  }
   0x4 LB: > { %s453_s18 = sadd.s32 4294967295, %s631_s17   ;;  %s25_s19 = sadd.s32 1, %s627_s16  ;;  %s631_s17 = sphi %s668_s17, %s16_s17   ;;  %s627_s16 = sphi %s666_s16, %s799_s16   ;;  %s623_s15 = sphi %s664_s15, %s798_s15   ;;  %s619_s14 = sphi %s662_s14, %s797_s14   ;;  %s615_s13 = sphi %s660_s13, %s796_s13   ;;  %s611_s12 = sphi %s658_s12, %s795_s12  }
   0x5   : > { %p26_p0 = scmp.ge.s32.totalorder %s25_s19, 3  ;;  %s61_s20 = sadd.s32 1, %s619_s14 }
   0x6   : > { %p68_p1 = scmp.ne.s32.totalorder %s619_s14, %s615_s13  ;;  %p69_p2 = scmp.eq.s32.totalorder %s631_s17, 0 }
   0x7   : > { %s801_s19 = smov (%p26_p0, %s25_s19), 0  ;;  %p74_p4 = scmp.ne.s32.totalorder %s615_s13, %s611_s12 }
   0x8   : > { %p694_p3 = por %p69_p2, %p68_p1  ;;  %s58_s22 = ssub.s32 %s627_s16, %s801_s19 }
   0x9   : > { %p75_p5 = scmp.eq.s32.totalorder %s453_s18, 0  ;;  %p59_p6 = scmp.eq.s32.totalorder %s58_s22, 0 }
   0xa   : > { %p495_p8 = scmp.lt.s32.totalorder %s631_s17, 3  ;;  %s161_s25 = sand.u32 1, %s619_s14  }
   0xb   : > { %p701_p7 = por %p75_p5, %p74_p4  ;;  %s474_s26 = sshll.u32 %s627_s16, 8 }
   0xc   : > { %s707_s24 = scalar_select %p59_p6, %s619_s14, %s61_s20  }
   0xd   : > { %s458_s27 = sshll.u32 %s161_s25, 4  ;;  %s714_s30 = scalar_lea.hbm %s789_s1, %s474_s26 }
   0xe   : > { %s165_s4 = scalar_lea.vmem [#allocation2], %s458_s27  ;;  %p718_p9 = pnand %p495_p8, %p694_p3 }
   0xf   : > { %s172_s5 = sshll.u32 %s165_s4, 4  ;;  %s724_s7 = scalar_lea.sflag [#allocation3], %s161_s25  ;;  %s722_s5 = int_to_ptr.vmem [resolvable:$true] %s172_s5 }
  0x10   : > { %s551_s8 = scalar_lea.hbm %s714_s30, 256  ;;  %p553_p11 = pneg %p718_p9 }
  0x11   : > { %p552_p10 = scmp.ne.s32.totalorder %s714_s30, %s551_s8  ;;  %s556_s11 = scalar_lea.hbm %s789_s1, 768 }
  0x12   : > { %p557_p0 = scmp.lt.u32.totalorder %s714_s30, %s789_s1  ;;  %p558_p1 = scmp.lt.u32.totalorder %s556_s11, %s551_s8 }
  0x13   : > { %p554_p12 = pnand %p553_p11, %p552_p10  ;;  %p560_p3 = scmp.lt.u32.totalorder %s551_s8, %s714_s30 }
  0x14   : > { %p559_p2 = por %p558_p1, %p557_p0 }
  0x15   : > { %p555_p13 = pneg %p554_p12 }
  0x16   : > { %p561_p4 = por %p560_p3, %p559_p2 }
  0x18   : > { %p562_p5 = pnand %p561_p4, %p555_p13 }
  0x1a   : > { %565 = shalt.err (!%p562_p5)
}
  0x1b   : > { %s566_s20 = scalar_lea.vmem %s722_s5, 256  ;;  %s633_s21 = smov [#allocation2]  }
  0x1c   : > { %p567_p6 = scmp.ne.s32.totalorder %s722_s5, %s566_s20  ;;  %s571_s22 = sshll.u32 %s633_s21, 4  ;;  %s572_s22 = int_to_ptr.vmem [resolvable:$false] %s571_s22 }
  0x1d   : > { %s573_s25 = scalar_lea.vmem %s572_s22, 512  ;;  %p574_p12 = scmp.lt.s32.totalorder %s722_s5, %s572_s22 }
  0x1e   : > { %p569_p8 = pnand %p567_p6, %p553_p11  ;;  %p575_p0 = scmp.lt.s32.totalorder %s573_s25, %s566_s20 }
  0x20   : > { %p570_p10 = pneg %p569_p8  ;;  %p576_p1 = por %p575_p0, %p574_p12 }
  0x22   : > { %p577_p2 = pnand %p576_p1, %p570_p10 }
  0x24   : > { %580 = shalt.err (!%p577_p2)
}
  0x25   : > { %s634_s26 = smov 64   ;;  %s635_s27 = smov 4  }
  0x26   : > { %494 = dma.hbm_to_vmem [thread:$0]  (!%p718_p9), %s714_s30, 256, %s722_s5, %s724_s7, %s634_s26, %s634_s26, %s635_s27  }
  0x27   : > { %p461_p11 = scmp.ge.s32.totalorder %s631_s17, 1  ;;  %p186_p13 = scmp.lt.s32.totalorder %s631_s17, 4 }
  0x29   : > { %p187_p3 = pnand %p461_p11, %p186_p13 }
  0x2a   : > { %s192_s28 = sand.u32 (!%p187_p3), 1, %s615_s13  }
  0x2b   : > { %190 = sbr.rel (%p187_p3) target bundleno = 279 (0x117), region = 32  ;;  %s462_s29 = sshll.u32 (!%p187_p3), %s192_s28, 4 }
  0x2c   : > { %s193_s4 = scalar_lea.sflag (!%p187_p3), [#allocation3], %s192_s28  ;;  %s196_s8 = scalar_lea.vmem (!%p187_p3), [#allocation2], %s462_s29 }
  0x32   : > { %606 = dma.done.wait (%p701_p7), %s193_s4, 256  }
  0x33   : > { %608 = vsyncadd (%p701_p7), %s193_s4, 4294967040  ;;  %v636_v0 = vmov 0.0   ;;  %vm637_vm0 = vmmov 0   ;;  %v548_v1 = vld [vmem:[%s196_s8] sm:$0xff]   ;;  %v549_v2 = vld [vmem:[%s196_s8 + $0x8] sm:$0xff]   ;;  %vm281_vm1 = vcmask 261120  }
  0x34   : > { %481 = vmatprep.subr.bf16.mxu0 %v636_v0  ;;  %485 = vmatprep.mubr.msk.bf16.mxu0 %vm637_vm0, %v636_v0  ;;  %v550_v3 = vld [vmem:[%s788_s0] sm:$0xff]   ;;  %p237_p9 = scmp.lt.s32.totalorder %s623_s15, 2  ;;  %vm334_vm2 = vcmask 257024  }
  0x35   : > { %482 = vmatpush3.bf16.msra.mxu0 %v548_v1 }
  0x36   : > { %483 = vmatprep.subr.bf16.mxu0 %v636_v0  ;;  %s803_s15 = smov (!%p237_p9, %s623_s15), 2 }
  0x37   : > { %s239_s7 = scalar_lea.vmem %s790_s2, %s803_s15  ;;  %s475_s9 = sshll.u32 %s803_s15, 3 }
  0x38   : > { %v465_v4 = vld [vmem:[%s239_s7] ss:$0 sm:$0xff]  ;;  %s248_s12 = scalar_lea.vmem %s791_s3, %s475_s9 }
  0x39   : > { %484 = vmatpush3.bf16.msra.mxu0 %v549_v2 }
  0x3c   : > { %486 = vmatmul.mubr.msk.bf16.vlgmr.msra.gmra.mrb[0].mxu0 %vm281_vm1, %v550_v3 }
 0x10f   : > { %v319_v5 = vpop.f32.mrb[0].mxu0 }
 0x110   : > { %v320_v6 = vadd.f32 %v465_v4, %v319_v5  ;;  %v487_v7 = vpop.f32.mrb[1].mxu0 }
 0x111   : > { %v322_v8 = vpop.f32.mrb[2].mxu0 }
 0x112   : > { %v476_v9 = vpack.c.bf16 %v320_v6, %v320_v6  ;;  %v323_v10 = vadd.f32 %v465_v4, %v322_v8  ;;  %v488_v11 = vpop.f32.mrb[3].mxu0 }
 0x114   : > { %335 = vst.msk [vmem:[%s248_s12] sm:$0xf] %vm334_vm2, %v476_v9  ;;  %v477_v12 = vpack.c.bf16 %v323_v10, %v323_v10 }
 0x116   : > { %336 = vst.msk [vmem:[%s248_s12 + $0x4] sm:$0xf] %vm334_vm2, %v477_v12 }
 0x117 PF: > { %s16_s17 = sadd.s32 1, %s631_s17   ;;  %s795_s12 = smov %s615_s13 }
 0x118   : > { %p13_p7 = scmp.ge.s32.totalorder %s16_s17, 5   ;;  %s796_s13 = smov %s619_s14 }
 0x119   : > { %s797_s14 = smov %s707_s24  ;;  %s798_s15 = smov %s627_s16 }
 0x11a   : > { %s799_s16 = smov %s801_s19  ;;  %15 = sbr.rel (!%p13_p7) target bundleno = 4 (0x4), region = 78 }
 0x121   :  { %367 = vsyncpa [#allocation3], 1 }
 0x122   :  { %369 = vsyncpa [#allocation3 + $0x1], 1 }

// kernel: attention_forward.5
= control target key start
LH: loop header
LB: loop body
LE: loop exit
PB: predicated region body
PF: predicated region fallthrough
CT: control target
= control target key end

     0   :  { %v157_v1 = vmov 0.0   ;;  %vm158_vm0 = vmmov 0   ;;  %s206_s0 = inlined_call_operand.vmem [shape: bf16[16,32], index: 0, kind: input, shape index: {}]   ;;  %s207_s1 = inlined_call_operand.vmem [shape: bf16[1,32,32], index: 1, kind: input, shape index: {}]   ;;  %s208_s2 = inlined_call_operand.vmem [shape: f32[1,1,32], index: 2, kind: input, shape index: {}]   ;;  %s209_s3 = inlined_call_operand.hbm [shape: f32[1,16,32], index: 3, kind: output, shape index: {}]  }
   0x1   :  { %v130_v0 = vld [vmem:[%s207_s1] sm:$0xff]   ;;  %117 = vmatprep.subr.bf16.mxu0 %v157_v1  ;;  %v131_v2 = vld [vmem:[%s207_s1 + $0x8] sm:$0xff]   ;;  %121 = vmatprep.mubr.msk.bf16.mxu0 %vm158_vm0, %v157_v1 }
   0x2   :  { %118 = vmatpush3.bf16.msra.mxu0 %v130_v0 }
   0x3   :  { %119 = vmatprep.subr.bf16.mxu0 %v157_v1 }
   0x4   :  { %8 = vsyncpa [#allocation3], 0  ;;  %v132_v3 = vld [vmem:[%s206_s0] sm:$0xff]   ;;  %vm46_vm1 = vcmask 261120   ;;  %s159_s20 = smov [#allocation2]  }
   0x5   :  { %v109_v4 = vld [vmem:[%s208_s2] ss:$0 sm:$0xff]  ;;  %s98_s21 = sshll.u32 %s159_s20, 4  ;;  %s99_s21 = int_to_ptr.vmem [resolvable:$true] %s98_s21 }
   0x6   :  { %120 = vmatpush3.bf16.msra.mxu0 %v131_v2  ;;  %s133_s1 = scalar_lea.vmem %s99_s21, 256  ;;  %p138_p1 = scmp.lt.s32.totalorder %s99_s21, %s99_s21 }
   0x7   :  { %p134_p0 = scmp.ne.s32.totalorder %s99_s21, %s133_s1  ;;  %p139_p2 = scmp.lt.s32.totalorder %s133_s1, %s133_s1 }
   0x9   :  { %122 = vmatmul.mubr.msk.bf16.vlgmr.msra.gmra.mrb[0].mxu0 %vm46_vm1, %v132_v3  ;;  %p140_p3 = por %p139_p2, %p138_p1 }
   0xb   :  { %p141_p4 = pnand %p140_p3, %p134_p0 }
  0xdc   :  { %v84_v5 = vpop.f32.mrb[0].mxu0 }
  0xdd   :  { %v85_v6 = vadd.f32 %v109_v4, %v84_v5  ;;  %v123_v7 = vpop.f32.mrb[1].mxu0 }
  0xde   :  { %v87_v8 = vpop.f32.mrb[2].mxu0 }
  0xdf   :  { %91 = vst.msk [vmem:[#allocation2] sm:$0xff] %vm46_vm1, %v85_v6  ;;  %v88_v9 = vadd.f32 %v109_v4, %v87_v8  ;;  %v124_v10 = vpop.f32.mrb[3].mxu0 }
  0xe1   :  { %92 = vst.msk [vmem:[#allocation2 + $0x8] sm:$0xff] %vm46_vm1, %v88_v9 }
  0xe2   :  { %144 = shalt.err (!%p141_p4)
}
  0xe3   :  { %s145_s22 = scalar_lea.hbm %s209_s3, 256 }
  0xe4   :  { %p146_p5 = scmp.ne.s32.totalorder %s209_s3, %s145_s22  ;;  %p149_p6 = scmp.lt.u32.totalorder %s145_s22, %s209_s3 }
  0xe6   :  { %p151_p7 = pnand %p149_p6, %p146_p5 }
  0xe8   :  { %154 = shalt.err (!%p151_p7)
}
  0xe9   :  { %s160_s27 = smov 128   ;;  %s161_s28 = smov 8  }
  0xea   :  { %104 = dma.vmem_to_hbm [thread:$0]  %s99_s21, 256, %s209_s3, [#allocation3], %s160_s27, %s160_s27, %s161_s28  }
  0xeb   :  { %155 = dma.done.wait [#allocation3], 256  }
  0xec   :  { %156 = vsyncadd [#allocation3], 4294967040 }
  0xed   :  { %108 = vsyncpa [#allocation3], 1 }

// kernel: attention_forward.4
= control target key start
LH: loop header
LB: loop body
LE: loop exit
PB: predicated region body
PF: predicated region fallthrough
CT: control target
= control target key end

     0   :  { %s787_s12 = smov 0   ;;  %s789_s13 = smov 0   ;;  %s861_s0 = inlined_call_operand.vmem [shape: bf16[3,2,8,8,4], index: 0, kind: input, shape index: {}, may-alias: {0,1,2}]   ;;  %s862_s1 = inlined_call_operand.vmem [shape: bf16[3,2,8,8,4], index: 1, kind: input, shape index: {}, may-alias: {0,1,2}]   ;;  %s863_s2 = inlined_call_operand.vmem [shape: bf16[3,2,8,8,4], index: 2, kind: input, shape index: {}, may-alias: {0,1,2}]   ;;  %s864_s3 = inlined_call_operand.vmem [shape: bf16[2,8,8,4], index: 3, kind: output, shape index: {}]  }
   0x1   :  { %s791_s14 = smov 0   ;;  %s793_s15 = smov 0  }
   0x2   :  { %s795_s16 = smov 0  }
   0x3 LB: > { %s31_s17 = sadd.s32 1, %s753_s14  ;;  %s35_s18 = sadd.s32 1, %s757_s15  ;;  %s761_s16 = sphi %s795_s16, %s13_s16   ;;  %s757_s15 = sphi %s793_s15, %s868_s15   ;;  %s753_s14 = sphi %s791_s14, %s867_s14   ;;  %s749_s13 = sphi %s789_s13, %s866_s13   ;;  %s745_s12 = sphi %s787_s12, %s865_s12  }
   0x4   : > { %p33_p0 = scmp.ge.s32.totalorder %s31_s17, 8  ;;  %p640_p1 = scmp.ge.s32.totalorder %s761_s16, 1 }
   0x5   : > { %p219_p2 = scmp.lt.s32.totalorder %s761_s16, 17 }
   0x6   : > { %s870_s17 = smov (%p33_p0, %s31_s17), 0  ;;  %s872_s18 = smov (!%p33_p0, %s35_s18), %s757_s15 }
   0x7   : > { %p220_p3 = pnand %p640_p1, %p219_p2  ;;  %p37_p4 = scmp.ge.s32.totalorder %s872_s18, 2 }
   0x8   : > { %p279_p5 = scmp.lt.s32.totalorder (!%p220_p3), %s749_s13, 1  ;;  %p281_p6 = scmp.lt.s32.totalorder (!%p220_p3), %s745_s12, 7  ;;  %vm333_vm0 = vcmask (!%p220_p3), 31744   ;;  %v763_v0 = vmov (!%p220_p3), 0.0   ;;  %vm764_vm1 = vmmov (!%p220_p3), 0   ;;  %vm330_vm2 = vcmask (!%p220_p3), 7168  }
   0x9   : > { %s874_s18 = smov (%p37_p4, %s872_s18), 0  ;;  %223 = sbr.rel (%p220_p3) target bundleno = 827 (0x33b), region = 32 }
   0xa   : > { %659 = vmatprep.subr.bf16.mxu0 (!%p220_p3), %v763_v0  ;;  %334 = vst.msk [vmem:[#allocation4] sm:$0xff] (!%p220_p3), %vm333_vm0, %v763_v0  ;;  %661 = vmatprep.mubr.msk.bf16.mxu0 (!%p220_p3), %vm764_vm1, %v763_v0  ;;  %v765_v4 = vmov (!%p220_p3), -inf   ;;  %vm387_vm3 = vcmask (!%p220_p3), 64512   ;;  %v766_v10 = vmov (!%p220_p3), 0   ;;  %vm415_vm4 = vcmask (!%p220_p3), 1043456  }
   0xb   : > { %665 = vmatprep.subr.bf16.mxu1 (!%p220_p3), %v763_v0  ;;  %667 = vmatprep.mubr.msk.bf16.mxu1 (!%p220_p3), %vm764_vm1, %v763_v0  ;;  %331 = vst.msk [vmem:[#allocation2] sm:$0xff] (!%p220_p3), %vm330_vm2, %v765_v4  ;;  %332 = vst.msk [vmem:[#allocation3] sm:$0xff] (!%p220_p3), %vm330_vm2, %v763_v0  ;;  %vm481_vm5 = vcmask (!%p220_p3), 27648  }
   0xc   : > { %715 = vset.pattern.permute.xlu0 (!%p220_p3), %v766_v10  ;;  %716 = vset.pattern.permute.xlu1 (!%p220_p3), %v766_v10 }
  0x10   : > { %s876_s13 = smov (!%p279_p5, %s749_s13), 1  ;;  %s878_s12 = smov (!%p281_p6, %s745_s12), 7 }
  0x11   : > { %s641_s19 = sshll.u32 %s876_s13, 3  ;;  %v459_v31 = vld [vmem:[#allocation4] sm:$0xff] }
  0x12   : > { %s287_s20 = sadd.s32 %s641_s19, %s878_s12  ;;  %v385_v11 = vld [vmem:[#allocation2] sm:$0xff]  ;;  %v386_v25 = vld [vmem:[#allocation3] sm:$0xff] }
  0x13   : > { %s818_s21 = sshll.u32 %s287_s20, 2 }
  0x14   : > { %s564_s24 = scalar_lea.vmem %s862_s1, %s818_s21  ;;  %s289_s27 = scalar_lea.vmem %s861_s0, %s818_s21 }
  0x15   : > { %v649_v1 = vld [vmem:[%s564_s24 + $0x40] sm:$0xf]  ;;  %s570_s30 = scalar_lea.vmem %s863_s2, %s818_s21  ;;  %s324_s6 = scalar_lea.vmem %s864_s3, %s818_s21 }
  0x16   : > { %v343_v2 = vsel %vm333_vm0, %v649_v1, 0  ;;  %v335_v3 = vld [vmem:[%s289_s27] sm:$0xf] }
  0x17   : > { %660 = vmatpush3.bf16.xpose.msra.mxu0 %v343_v2  ;;  %v650_v15 = vld [vmem:[%s570_s30 + $0x80] sm:$0xf] }
  0x18   : > { %v417_v16 = vsel %vm415_vm4, %v650_v15, 0 }
  0x19   : > { %666 = vmatpush3.bf16.msra.mxu1 %v417_v16 }
  0x1e   : > { %662 = vmatmul.mubr.msk.bf16.vlgmr.msra.gmra.mrb[0].mxu0 %vm333_vm0, %v335_v3 }
  0xf1   : > { %v379_v5 = vpop.f32.mrb[0].mxu0 }
  0xf2   : > { %v663_v6 = vpop.f32.mrb[1].mxu0  ;;  %v388_v7 = vsel %vm387_vm3, %v379_v5, -inf }
  0xf3   : > { %389 = vmax.xlane.f32.xlu0 %v388_v7  ;;  %v382_v8 = vpop.f32.mrb[2].mxu0 }
  0xf4   : > { %v664_v9 = vpop.f32.mrb[3].mxu0 }
 0x180   : > { %v390_v12 = vpop.xlane.xlu0 %389 }
 0x181   : > { %v391_v13 = vmax.f32 %v385_v11, %v390_v12 }
 0x183   : > { %v392_v14 = vsub.f32 %v385_v11, %v391_v13  ;;  %410 = vst.msk [vmem:[#allocation2] sm:$0xff] %vm330_vm2, %v391_v13  ;;  %397 = vperm.xlu0 %715, %v391_v13  }
 0x185   : > { %v393_v23 = vmul.f32 1.442695, %v392_v14 }
 0x202   : > { %v398_v17 = vpop.permute.xlu0 %397 }
 0x203   : > { %v400_v18 = vsub.f32 %v379_v5, %v398_v17 }
 0x205   : > { %v401_v19 = vmul.f32 1.442695, %v400_v18 }
 0x207   : > { %717 = vpow2.f32 %v401_v19 }
 0x208   : > { %719 = vpow2.f32 %v393_v23 }
 0x211   : > { %v718_v20 = vpop.eup %717 }
 0x212   : > { %v404_v21 = vsel %vm387_vm3, %v718_v20, 0.0  ;;  %v411_v22 = vpack.c.bf16 %v718_v20, %v718_v20  ;;  %v720_v24 = vpop.eup %719 }
 0x213   : > { %405 = vadd.xlane.f32.xlu1 %v404_v21  ;;  %v403_v26 = vmul.f32 %v720_v24, %v386_v25 }
 0x214   : > { %668 = vmatmul.mubr.msk.bf16.vlgmr.msra.gmra.mrb[0].mxu1 %vm387_vm3, %v411_v22 }
 0x224   : > { %462 = vperm.xlu1 %716, %v720_v24  }
 0x2a0   : > { %v406_v27 = vpop.xlane.xlu1 %405 }
 0x2a1   : > { %v407_v28 = vadd.f32 %v406_v27, %v403_v26 }
 0x2a3   : > { %409 = vst.msk [vmem:[#allocation3] sm:$0xff] %vm330_vm2, %v407_v28 }
 0x2a4   : > { %v463_v32 = vpop.permute.xlu1 %462 }
 0x2a5   : > { %v465_v33 = vmul.f32 %v463_v32, %v459_v31 }
 0x2aa   : > { %v471_v29 = vld [vmem:[#allocation3] sm:$0xff] }
 0x2ab   : > { %721 = vrcp.f32 %v471_v29 }
 0x2b5   : > { %v722_v30 = vpop.eup %721 }
 0x2b6   : > { %476 = vperm.xlu1 %716, %v722_v30  }
 0x2e7   : > { %v453_v34 = vpop.f32.mrb[0].mxu1 }
 0x2e8   : > { %v466_v35 = vadd.f32 %v465_v33, %v453_v34  ;;  %v669_v36 = vpop.f32.mrb[1].mxu1 }
 0x2e9   : > { %v456_v37 = vpop.f32.mrb[2].mxu1 }
 0x2ea   : > { %467 = vst.msk [vmem:[#allocation4] sm:$0xff] %vm333_vm0, %v466_v35  ;;  %v670_v38 = vpop.f32.mrb[3].mxu1 }
 0x2f1   : > { %v473_v39 = vld [vmem:[#allocation4] sm:$0xff] }
 0x335   : > { %v477_v40 = vpop.permute.xlu1 %476 }
 0x336   : > { %v479_v41 = vmul.f32 %v477_v40, %v473_v39 }
 0x338   : > { %v480_v42 = vpack.c.bf16 %v479_v41, %v479_v41 }
 0x33a   : > { %482 = vst.msk [vmem:[%s324_s6] sm:$0xf] %vm481_vm5, %v480_v42 }
 0x33b PF: > { %s13_s16 = sadd.s32 1, %s761_s16   ;;  %s865_s12 = smov %s753_s14 }
 0x33c   : > { %p10_p7 = scmp.ge.s32.totalorder %s13_s16, 18   ;;  %s866_s13 = smov %s757_s15 }
 0x33d   : > { %s867_s14 = smov %s870_s17  ;;  %s868_s15 = smov %s874_s18 }
 0x33e   :  { %12 = sbr.rel (!%p10_p7) target bundleno = 3 (0x3), region = 76 }

</bundles_post_ra>
